<compile_context>
chip_gen: v7x
topology: tpu7x:2x2x1
jax: 0.10.0
libtpu: 0.0.40
codegen_flags: <defaults>
</compile_context>

<pallas_src>
import functools

import jax
import jax.numpy as jnp
import numpy as np
from jax import lax
from jax.experimental import pallas as pl
from jax.experimental.pallas import tpu as pltpu


def _round_up(x, m):
    return ((x + m - 1) // m) * m


def _count_proj_kernel(ids_ref, w_ref, b_ref, out_ref, acc_ref, *, tv, n_tok):
    """Count-vectorize + Linear, one (batch-tile, d-tile, vocab-tile) step.

    ids_ref : VMEM [BT, L]  int32   (padding slots are -1 -> match nothing)
    w_ref   : VMEM [TV, TD] f32     (slice of W.T, zero-padded)
    b_ref   : VMEM [1, TD]  f32
    out_ref : VMEM [BT, TD] f32     (this (i, j) output tile)
    acc_ref : VMEM [BT, TD] f32     (resident accumulator across vocab axis)
    """
    k = pl.program_id(2)

    @pl.when(k == 0)
    def _():
        acc_ref[...] = jnp.zeros_like(acc_ref)

    ids = ids_ref[...]                                        # (BT, L) int32
    bt = ids.shape[0]
    # vocab column ids covered by this vocab tile
    vids = lax.broadcasted_iota(jnp.int32, (bt, tv), 1) + k * tv

    # counts[b, v] = sum_l (ids[b, l] == v); L is small -> static unroll (VPU)
    counts = jnp.zeros((bt, tv), jnp.float32)
    for l in range(n_tok):
        counts = counts + (ids[:, l:l + 1] == vids).astype(jnp.float32)

    # MXU: (BT, TV) @ (TV, TD) accumulated in f32
    acc_ref[...] += jnp.dot(counts, w_ref[...],
                            preferred_element_type=jnp.float32)

    @pl.when(k == pl.num_programs(2) - 1)
    def _():
        out_ref[...] = (acc_ref[...] + b_ref[...]).astype(out_ref.dtype)


def count_vectorizer_forward(input_texts, vocab, weight, bias, max_len=None):
    """JAX/Pallas equivalent of CountVectorizer.forward.

    input_texts : list[str]
    vocab       : list[str] (must contain '[unknown]')
    weight      : [d_model, V] float32  (nn.Linear weight layout)
    bias        : [d_model]    float32
    returns     : [B, 1, d_model] float32
    """
    V = len(vocab)
    d_model = weight.shape[0]
    word_to_idx = {w: i for i, w in enumerate(vocab)}
    unk = word_to_idx['[unknown]']

    # ---- Python-side tokenization (string ops have no Pallas equivalent) ---
    tok_rows = [[word_to_idx.get(w.lower(), unk) for w in text.split()]
                for text in input_texts]
    B = len(input_texts)
    L = max(1, max((len(r) for r in tok_rows), default=0))
    if max_len is not None:
        L = min(L, max_len)

    # ---- padding / tiling ---------------------------------------------------
    BT = min(128, _round_up(max(B, 1), 8))        # batch rows per grid step
    Bp = _round_up(max(B, 1), BT)
    TD = min(512, _round_up(d_model, 128))        # d_model tile (lane-dense)
    Dp = _round_up(d_model, TD)
    TV = min(512, _round_up(V, 128))              # vocab tile (reduction)
    Vp = _round_up(V, TV)

    ids = np.full((Bp, L), -1, dtype=np.int32)    # -1 pad: matches no column
    for b, row in enumerate(tok_rows):
        row = row[:L]
        ids[b, :len(row)] = row
    ids = jnp.asarray(ids)

    # W.T padded to [Vp, Dp]; padded rows/cols are zero (contribute nothing)
    w_t = jnp.zeros((Vp, Dp), jnp.float32).at[:V, :d_model].set(
        jnp.asarray(weight).T)
    b_p = jnp.zeros((1, Dp), jnp.float32).at[0, :d_model].set(
        jnp.asarray(bias))

    grid = (Bp // BT, Dp // TD, Vp // TV)
    kernel = functools.partial(_count_proj_kernel, tv=TV, n_tok=L)

    cost = pl.CostEstimate(
        flops=2 * Bp * Vp * Dp + Bp * L * Vp,
        transcendentals=0,
        bytes_accessed=(grid[0] * Vp * Dp + Bp * Dp + Dp) * 4 + Bp * L * 4,
    )

    out_p = pl.pallas_call(
        kernel,
        out_shape=jax.ShapeDtypeStruct((Bp, Dp), jnp.float32),
        grid_spec=pltpu.PrefetchScalarGridSpec(
            num_scalar_prefetch=0,
            grid=grid,
            in_specs=[
                pl.BlockSpec((BT, L), lambda i, j, k: (i, 0)),    # token ids
                pl.BlockSpec((TV, TD), lambda i, j, k: (k, j)),   # W.T tile
                pl.BlockSpec((1, TD), lambda i, j, k: (0, j)),    # bias tile
            ],
            out_specs=pl.BlockSpec((BT, TD), lambda i, j, k: (i, j)),
            scratch_shapes=[pltpu.VMEM((BT, TD), jnp.float32)],
        ),
        compiler_params=pltpu.CompilerParams(
            dimension_semantics=("parallel", "parallel", "arbitrary")),
        cost_estimate=cost,
    )(ids, w_t, b_p)

    # slice away padding, add the seq dim (unsqueeze(1))
    return out_p[:B, :d_model][:, None, :]


if __name__ == "__main__":
    # deterministic parameter init (synthetic, no checkpoint load)
    vocab = ["the", "cat", "sat", "on", "mat", "dog", "ran", "[unknown]"]
    V = len(vocab)
    d_model = 32

    key = jax.random.PRNGKey(0)
    kw, kb = jax.random.split(key)
    # nn.Linear(V, d_model): weight [d_model, V], bias [d_model]
    bound = 1.0 / np.sqrt(V)
    weight = jax.random.uniform(kw, (d_model, V), jnp.float32, -bound, bound)
    bias = jax.random.uniform(kb, (d_model,), jnp.float32, -bound, bound)

    input_texts = [
        "The cat sat on the mat",
        "a dog ran fast",
    ]

    out = count_vectorizer_forward(input_texts, vocab, weight, bias)
    out = jax.block_until_ready(out)
    assert out.shape == (2, 1, d_model), out.shape

    # pure-numpy reference check (mirrors the PyTorch module exactly)
    w_np = np.asarray(weight)
    b_np = np.asarray(bias)
    counts_ref = np.zeros((2, V), np.float32)
    for i, text in enumerate(input_texts):
        for w in text.split():
            w = w.lower()
            idx = vocab.index(w) if w in vocab else vocab.index('[unknown]')
            counts_ref[i, idx] += 1
    ref = (counts_ref @ w_np.T + b_np)[:, None, :]
    np.testing.assert_allclose(np.asarray(out), ref, rtol=1e-5, atol=1e-5)

    print("KERNEL_OK")
</pallas_src>

<mosaic_0001>
module attributes {stable_mosaic.version = 11 : i64} {
  func.func @_count_proj_kernel(%arg0: i32, %arg1: i32, %arg2: i32, %arg3: memref<8x6xi32, #tpu.memory_space<vmem>>, %arg4: memref<128x128xf32, #tpu.memory_space<vmem>>, %arg5: memref<1x128xf32, #tpu.memory_space<vmem>>, %arg6: memref<8x128xf32, #tpu.memory_space<vmem>>, %arg7: memref<8x128xf32, #tpu.memory_space<vmem>>) attributes {dimension_semantics = [#tpu.dimension_semantics<parallel>, #tpu.dimension_semantics<parallel>, #tpu.dimension_semantics<arbitrary>], iteration_bounds = array<i64: 1, 1, 1>, scalar_prefetch = 0 : i64, scratch_operands = 1 : i64, tpu.core_type = #tpu.core_type<tc>, window_params = [{transform_indices = @transform_0, window_bounds = array<i64: 8, 6>}, {transform_indices = @transform_1, window_bounds = array<i64: 128, 128>}, {transform_indices = @transform_2, window_bounds = array<i64: 1, 128>}, {transform_indices = @transform_3, window_bounds = array<i64: 8, 128>}]} {
    %c0_i32 = arith.constant 0 : i32
    %0 = arith.cmpi eq, %arg2, %c0_i32 : i32
    %1 = arith.extui %0 : i1 to i32
    %c0_i32_0 = arith.constant 0 : i32
    %2 = arith.cmpi ne, %1, %c0_i32_0 : i32
    scf.if %2 {
      %cst_11 = arith.constant 0.000000e+00 : f32
      %53 = vector.broadcast %cst_11 : f32 to vector<8x128xf32>
      %c0_12 = arith.constant 0 : index
      %c0_13 = arith.constant 0 : index
      %54 = vector.load %arg7[%c0_12, %c0_13] : memref<8x128xf32, #tpu.memory_space<vmem>>, vector<8x128xf32>
      tpu.vector_store %arg7[%c0_12, %c0_13], %53 {strides = array<i32>} : memref<8x128xf32, #tpu.memory_space<vmem>>, vector<8x128xf32>,
    } else {
    }
    %c0 = arith.constant 0 : index
    %c0_1 = arith.constant 0 : index
    %3 = vector.load %arg3[%c0, %c0_1] : memref<8x6xi32, #tpu.memory_space<vmem>>, vector<8x6xi32>
    %4 = tpu.iota {dimensions = array<i32: 1>} : vector<8x128xi32>
    %c128_i32 = arith.constant 128 : i32
    %5 = arith.muli %arg2, %c128_i32 : i32
    %6 = vector.broadcast %5 : i32 to vector<8x128xi32>
    %7 = arith.addi %4, %6 : vector<8x128xi32>
    %cst = arith.constant 0.000000e+00 : f32
    %8 = vector.broadcast %cst : f32 to vector<8x128xf32>
    %9 = vector.extract_strided_slice %3 {offsets = [0, 0], sizes = [8, 1], strides = [1, 1]} : vector<8x6xi32> to vector<8x1xi32>
    %10 = vector.broadcast %9 : vector<8x1xi32> to vector<8x128xi32>
    %11 = arith.cmpi eq, %10, %7 : vector<8x128xi32>
    %12 = arith.extui %11 : vector<8x128xi1> to vector<8x128xi32>
    %13 = arith.sitofp %12 : vector<8x128xi32> to vector<8x128xf32>
    %14 = arith.addf %8, %13 : vector<8x128xf32>
    %15 = vector.extract_strided_slice %3 {offsets = [0, 1], sizes = [8, 1], strides = [1, 1]} : vector<8x6xi32> to vector<8x1xi32>
    %16 = vector.broadcast %15 : vector<8x1xi32> to vector<8x128xi32>
    %17 = arith.cmpi eq, %16, %7 : vector<8x128xi32>
    %18 = arith.extui %17 : vector<8x128xi1> to vector<8x128xi32>
    %19 = arith.sitofp %18 : vector<8x128xi32> to vector<8x128xf32>
    %20 = arith.addf %14, %19 : vector<8x128xf32>
    %21 = vector.extract_strided_slice %3 {offsets = [0, 2], sizes = [8, 1], strides = [1, 1]} : vector<8x6xi32> to vector<8x1xi32>
    %22 = vector.broadcast %21 : vector<8x1xi32> to vector<8x128xi32>
    %23 = arith.cmpi eq, %22, %7 : vector<8x128xi32>
    %24 = arith.extui %23 : vector<8x128xi1> to vector<8x128xi32>
    %25 = arith.sitofp %24 : vector<8x128xi32> to vector<8x128xf32>
    %26 = arith.addf %20, %25 : vector<8x128xf32>
    %27 = vector.extract_strided_slice %3 {offsets = [0, 3], sizes = [8, 1], strides = [1, 1]} : vector<8x6xi32> to vector<8x1xi32>
    %28 = vector.broadcast %27 : vector<8x1xi32> to vector<8x128xi32>
    %29 = arith.cmpi eq, %28, %7 : vector<8x128xi32>
    %30 = arith.extui %29 : vector<8x128xi1> to vector<8x128xi32>
    %31 = arith.sitofp %30 : vector<8x128xi32> to vector<8x128xf32>
    %32 = arith.addf %26, %31 : vector<8x128xf32>
    %33 = vector.extract_strided_slice %3 {offsets = [0, 4], sizes = [8, 1], strides = [1, 1]} : vector<8x6xi32> to vector<8x1xi32>
    %34 = vector.broadcast %33 : vector<8x1xi32> to vector<8x128xi32>
    %35 = arith.cmpi eq, %34, %7 : vector<8x128xi32>
    %36 = arith.extui %35 : vector<8x128xi1> to vector<8x128xi32>
    %37 = arith.sitofp %36 : vector<8x128xi32> to vector<8x128xf32>
    %38 = arith.addf %32, %37 : vector<8x128xf32>
    %39 = vector.extract_strided_slice %3 {offsets = [0, 5], sizes = [8, 1], strides = [1, 1]} : vector<8x6xi32> to vector<8x1xi32>
    %40 = vector.broadcast %39 : vector<8x1xi32> to vector<8x128xi32>
    %41 = arith.cmpi eq, %40, %7 : vector<8x128xi32>
    %42 = arith.extui %41 : vector<8x128xi1> to vector<8x128xi32>
    %43 = arith.sitofp %42 : vector<8x128xi32> to vector<8x128xf32>
    %44 = arith.addf %38, %43 : vector<8x128xf32>
    %c0_2 = arith.constant 0 : index
    %c0_3 = arith.constant 0 : index
    %45 = vector.load %arg7[%c0_2, %c0_3] : memref<8x128xf32, #tpu.memory_space<vmem>>, vector<8x128xf32>
    %c0_4 = arith.constant 0 : index
    %c0_5 = arith.constant 0 : index
    %46 = vector.load %arg4[%c0_4, %c0_5] : memref<128x128xf32, #tpu.memory_space<vmem>>, vector<128x128xf32>
    %cst_6 = arith.constant dense<0.000000e+00> : vector<8x128xf32>
    %47 = tpu.matmul %44, %46, %cst_6 {dimension_numbers = #tpu.dot_dimension_numbers<[1], [0], [0], [1], [0, 0, 1, 1], [], []>} : vector<8x128xf32>, vector<128x128xf32>, vector<8x128xf32> -> vector<8x128xf32>
    %48 = arith.addf %45, %47 : vector<8x128xf32>
    %c0_7 = arith.constant 0 : index
    %c0_8 = arith.constant 0 : index
    %49 = vector.load %arg7[%c0_7, %c0_8] : memref<8x128xf32, #tpu.memory_space<vmem>>, vector<8x128xf32>
    tpu.vector_store %arg7[%c0_7, %c0_8], %48 {strides = array<i32>} : memref<8x128xf32, #tpu.memory_space<vmem>>, vector<8x128xf32>,
    %c0_i32_9 = arith.constant 0 : i32
    %50 = arith.cmpi eq, %arg2, %c0_i32_9 : i32
    %51 = arith.extui %50 : i1 to i32
    %c0_i32_10 = arith.constant 0 : i32
    %52 = arith.cmpi ne, %51, %c0_i32_10 : i32
    scf.if %52 {
      %c0_11 = arith.constant 0 : index
      %c0_12 = arith.constant 0 : index
      %53 = vector.load %arg7[%c0_11, %c0_12] : memref<8x128xf32, #tpu.memory_space<vmem>>, vector<8x128xf32>
      %c0_13 = arith.constant 0 : index
      %c0_14 = arith.constant 0 : index
      %54 = vector.load %arg5[%c0_13, %c0_14] : memref<1x128xf32, #tpu.memory_space<vmem>>, vector<1x128xf32>
      %55 = vector.broadcast %54 : vector<1x128xf32> to vector<8x128xf32>
      %56 = arith.addf %53, %55 : vector<8x128xf32>
      %c0_15 = arith.constant 0 : index
      %c0_16 = arith.constant 0 : index
      %57 = vector.load %arg6[%c0_15, %c0_16] : memref<8x128xf32, #tpu.memory_space<vmem>>, vector<8x128xf32>
      tpu.vector_store %arg6[%c0_15, %c0_16], %56 {strides = array<i32>} : memref<8x128xf32, #tpu.memory_space<vmem>>, vector<8x128xf32>,
    } else {
    }
    return
  }
  func.func @transform_0(%arg0: i32, %arg1: i32, %arg2: i32) -> (i32, i32) {
    %c0_i32 = arith.constant 0 : i32
    %c0_i32_0 = arith.constant 0 : i32
    return %arg0, %c0_i32 : i32, i32
  }
  func.func @transform_1(%arg0: i32, %arg1: i32, %arg2: i32) -> (i32, i32) {
    %c0_i32 = arith.constant 0 : i32
    return %arg2, %arg1 : i32, i32
  }
  func.func @transform_2(%arg0: i32, %arg1: i32, %arg2: i32) -> (i32, i32) {
    %c0_i32 = arith.constant 0 : i32
    %c0_i32_0 = arith.constant 0 : i32
    return %c0_i32, %arg1 : i32, i32
  }
  func.func @transform_3(%arg0: i32, %arg1: i32, %arg2: i32) -> (i32, i32) {
    %c0_i32 = arith.constant 0 : i32
    return %arg0, %arg1 : i32, i32
  }
}

</mosaic_0001>

<bundles_post_ra>
// kernel: tpu_custom_call.1
= control target key start
LH: loop header
LB: loop body
LE: loop exit
PB: predicated region body
PF: predicated region fallthrough
CT: control target
= control target key end

     0   :  { %8 = vsyncpa [#allocation4], 0  ;;  %s467_s0 = inlined_call_operand.hbm [shape: s32[8,6], index: 0, kind: input, shape index: {}]   ;;  %s468_s1 = inlined_call_operand.hbm [shape: f32[128,128], index: 1, kind: input, shape index: {}]   ;;  %s469_s2 = inlined_call_operand.vmem [shape: f32[1,128], index: 2, kind: input, shape index: {}]   ;;  %s470_s3 = inlined_call_operand.hbm [shape: f32[8,128], index: 3, kind: output, shape index: {}]  }
   0x1   :  { %9 = vsyncpa [#allocation7], 0 }
   0x2   :  { %10 = vsyncpa [#allocation5], 0  ;;  %s387_s12 = smov [#allocation3]   ;;  %s388_s14 = smov [#allocation6]  }
   0x3   :  { %s17_s13 = sshll.u32 %s387_s12, 4  ;;  %s26_s15 = sshll.u32 %s388_s14, 4  ;;  %s18_s13 = int_to_ptr.vmem [resolvable:$true] %s17_s13  ;;  %s421_s15 = int_to_ptr.vmem [resolvable:$true] %s26_s15 }
   0x4   :  { %s315_s18 = scalar_lea.hbm %s467_s0, 128 }
   0x5   :  { %p316_p0 = scmp.ne.s32.totalorder %s467_s0, %s315_s18  ;;  %p319_p1 = scmp.lt.u32.totalorder %s315_s18, %s467_s0 }
   0x7   :  { %p321_p2 = pnand %p319_p1, %p316_p0 }
   0x9   :  { %324 = shalt.err (!%p321_p2)
}
   0xa   :  { %s325_s23 = scalar_lea.vmem %s18_s13, 128  ;;  %p330_p4 = scmp.lt.s32.totalorder %s18_s13, %s18_s13 }
   0xb   :  { %p326_p3 = scmp.ne.s32.totalorder %s18_s13, %s325_s23  ;;  %p331_p5 = scmp.lt.s32.totalorder %s325_s23, %s325_s23 }
   0xd   :  { %p332_p6 = por %p331_p5, %p330_p4 }
   0xf   :  { %p333_p7 = pnand %p332_p6, %p326_p3 }
  0x11   :  { %336 = shalt.err (!%p333_p7)
}
  0x12   :  { %20 = dma.hbm_to_vmem [thread:$0]  %s467_s0, 128, %s18_s13, [#allocation4]  }
  0x13   :  { %s337_s28 = scalar_lea.hbm %s468_s1, 2048 }
  0x14   :  { %p338_p8 = scmp.ne.s32.totalorder %s468_s1, %s337_s28  ;;  %p341_p9 = scmp.lt.u32.totalorder %s337_s28, %s468_s1 }
  0x16   :  { %p343_p10 = pnand %p341_p9, %p338_p8 }
  0x18   :  { %346 = shalt.err (!%p343_p10)
}
  0x19   :  { %s347_s6 = scalar_lea.vmem %s421_s15, 2048  ;;  %p352_p12 = scmp.lt.s32.totalorder %s421_s15, %s421_s15 }
  0x1a   :  { %p348_p11 = scmp.ne.s32.totalorder %s421_s15, %s347_s6  ;;  %p353_p13 = scmp.lt.s32.totalorder %s347_s6, %s347_s6 }
  0x1c   :  { %p354_p0 = por %p353_p13, %p352_p12 }
  0x1e   :  { %p355_p1 = pnand %p354_p0, %p348_p11 }
  0x20   :  { %358 = shalt.err (!%p355_p1)
}
  0x21   :  { %s389_s0 = smov 128   ;;  %s390_s7 = smov 8  }
  0x22   :  { %32 = dma.hbm_to_vmem [thread:$0]  %s468_s1, 2048, %s421_s15, [#allocation7], %s389_s0, %s389_s0, %s390_s7  }
  0x23   :  { %381 = dma.done.wait [#allocation4], 128  }
  0x24   :  { %382 = vsyncadd [#allocation4], 4294967168 }
  0x25   :  { %383 = dma.done.wait [#allocation7], 2048  }
  0x26   :  { %384 = vsyncadd [#allocation7], 4294965248  ;;  %v391_v0 = vmov 0   ;;  %v392_v1 = vmov 2   ;;  %v393_v2 = vmov 0.0|0.0   ;;  %v46_v3 = vld [vmem:[#allocation3] sm:$0xff]  ;;  %v47_v33 = vlaneseq }
  0x27   :  { %309 = vset.pattern.permute.xlu0 %v391_v0  ;;  %311 = vset.pattern.permute.xlu1 %v392_v1  ;;  %v95_v4 = vld [vmem:[#allocation6] sm:$0xff]  ;;  %v96_v5 = vld [vmem:[#allocation6 + $0x8] sm:$0xff]  ;;  %v97_v7 = vld [vmem:[#allocation6 + $0x10] sm:$0xff]  ;;  %v394_v10 = vmov 1   ;;  %v395_v11 = vmov 3   ;;  %v396_v17 = vmov 4  }
  0x28   :  { %271 = vmatprep.subr.bf16.mxu0 %v393_v2  ;;  %53 = vperm.xlu0 %309, %v46_v3   ;;  %v272_v6 = vpack.c.bf16 %v96_v5, %v95_v4  ;;  %v98_v8 = vld [vmem:[#allocation6 + $0x18] sm:$0xff]  ;;  %v99_v12 = vld [vmem:[#allocation6 + $0x20] sm:$0xff]  ;;  %v100_v13 = vld [vmem:[#allocation6 + $0x28] sm:$0xff]  ;;  %v397_v18 = vmov 5   ;;  %vm398_vm0 = vmmov 0   ;;  %v399_v25 = vmov 0.0  }
  0x29   :  { %67 = vperm.xlu1 %311, %v46_v3   ;;  %v275_v9 = vpack.c.bf16 %v98_v8, %v97_v7  ;;  %v278_v14 = vpack.c.bf16 %v100_v13, %v99_v12  ;;  %v101_v15 = vld [vmem:[#allocation6 + $0x30] sm:$0xff]  ;;  %v102_v16 = vld [vmem:[#allocation6 + $0x38] sm:$0xff]  ;;  %v103_v20 = vld [vmem:[#allocation6 + $0x40] sm:$0xff]  ;;  %268 = vmatprep.mubr.msk.f32.mxu0 %vm398_vm0, %v399_v25  ;;  %v48_v34 = vand.u32 127, %v47_v33  ;;  %s400_s11 = smov [#allocation8]  }
  0x2a   :  { %273 = vmatpush3.bf16.msra.mxu0 %v272_v6  ;;  %v281_v19 = vpack.c.bf16 %v102_v16, %v101_v15  ;;  %v104_v21 = vld [vmem:[#allocation6 + $0x48] sm:$0xff]  ;;  %v105_v23 = vld [vmem:[#allocation6 + $0x50] sm:$0xff]  ;;  %v106_v24 = vld [vmem:[#allocation6 + $0x58] sm:$0xff]  ;;  %s202_s12 = sshll.u32 %s400_s11, 4  ;;  %s203_s12 = int_to_ptr.vmem [resolvable:$true] %s202_s12 }
  0x2b   :  { %274 = vmatprep.subr.bf16.mxu0 %v393_v2  ;;  %v284_v22 = vpack.c.bf16 %v104_v21, %v103_v20  ;;  %v287_v26 = vpack.c.bf16 %v106_v24, %v105_v23  ;;  %v107_v27 = vld [vmem:[#allocation6 + $0x60] sm:$0xff]  ;;  %v108_v28 = vld [vmem:[#allocation6 + $0x68] sm:$0xff]  ;;  %v109_v30 = vld [vmem:[#allocation6 + $0x70] sm:$0xff]  ;;  %s359_s13 = scalar_lea.vmem %s203_s12, 128  ;;  %p364_p3 = scmp.lt.s32.totalorder %s203_s12, %s203_s12 }
  0x2c   :  { %310 = vset.pattern.permute.xlu0 %v394_v10  ;;  %v290_v29 = vpack.c.bf16 %v108_v28, %v107_v27  ;;  %v110_v31 = vld [vmem:[#allocation6 + $0x78] sm:$0xff]  ;;  %p360_p2 = scmp.ne.s32.totalorder %s203_s12, %s359_s13  ;;  %p365_p4 = scmp.lt.s32.totalorder %s359_s13, %s359_s13 }
  0x2d   :  { %312 = vset.pattern.permute.xlu1 %v395_v11  ;;  %60 = vperm.xlu0 %310, %v46_v3   ;;  %v293_v32 = vpack.c.bf16 %v110_v31, %v109_v30  ;;  %v218_v52 = vld [vmem:[%s469_s2] ss:$0 sm:$0xff] }
  0x2e   :  { %74 = vperm.xlu1 %312, %v46_v3   ;;  %276 = vmatpush3.bf16.msra.mxu0 %v275_v9  ;;  %p366_p5 = por %p365_p4, %p364_p3 }
  0x2f   :  { %277 = vmatprep.subr.bf16.mxu0 %v393_v2 }
  0x30   :  { %p367_p6 = pnand %p366_p5, %p360_p2 }
  0x31   :  { %314 = vset.pattern.permute.xlu0 %v397_v18 }
  0x32   :  { %313 = vset.pattern.permute.xlu1 %v396_v17  ;;  %88 = vperm.xlu0 %314, %v46_v3  }
  0x33   :  { %81 = vperm.xlu1 %313, %v46_v3   ;;  %279 = vmatpush3.bf16.msra.mxu0 %v278_v14 }
  0x34   :  { %280 = vmatprep.subr.bf16.mxu0 %v393_v2 }
  0x37   :  { %282 = vmatpush3.bf16.msra.mxu0 %v281_v19 }
  0x38   :  { %283 = vmatprep.subr.bf16.mxu0 %v393_v2 }
  0x3b   :  { %285 = vmatpush3.bf16.msra.mxu0 %v284_v22 }
  0x3c   :  { %286 = vmatprep.subr.bf16.mxu0 %v393_v2 }
  0x3f   :  { %288 = vmatpush3.bf16.msra.mxu0 %v287_v26 }
  0x40   :  { %289 = vmatprep.subr.bf16.mxu0 %v393_v2 }
  0x43   :  { %291 = vmatpush3.bf16.msra.mxu0 %v290_v29 }
  0x44   :  { %292 = vmatprep.subr.bf16.mxu0 %v393_v2 }
  0x47   :  { %294 = vmatpush3.bf16.msra.mxu0 %v293_v32 }
  0xa7   :  { %v54_v35 = vpop.permute.xlu0 %53 }
  0xa8   :  { %v68_v36 = vpop.permute.xlu1 %67  ;;  %vm55_vm1 = vcmp.eq.s32.totalorder %v54_v35, %v48_v34 }
  0xa9   :  { %vm69_vm2 = vcmp.eq.s32.totalorder %v68_v36, %v48_v34  ;;  %v212_v39 = vsel %vm55_vm1, 1.0, %v399_v25 }
  0xaa   :  { %v214_v42 = vsel %vm69_vm2, 1.0, %v399_v25 }
  0xac   :  { %v61_v37 = vpop.permute.xlu0 %60 }
  0xad   :  { %v75_v38 = vpop.permute.xlu1 %74  ;;  %vm62_vm3 = vcmp.eq.s32.totalorder %v61_v37, %v48_v34 }
  0xae   :  { %v213_v40 = vsel %vm62_vm3, 1.0, %v399_v25  ;;  %vm76_vm4 = vcmp.eq.s32.totalorder %v75_v38, %v48_v34 }
  0xaf   :  { %v65_v41 = vadd.f32 %v213_v40, %v212_v39  ;;  %v215_v46 = vsel %vm76_vm4, 1.0, %v399_v25 }
  0xb1   :  { %v72_v43 = vadd.f32 %v214_v42, %v65_v41  ;;  %v89_v45 = vpop.permute.xlu0 %88 }
  0xb2   :  { %v82_v44 = vpop.permute.xlu1 %81  ;;  %vm90_vm6 = vcmp.eq.s32.totalorder %v89_v45, %v48_v34 }
  0xb3   :  { %vm83_vm5 = vcmp.eq.s32.totalorder %v82_v44, %v48_v34  ;;  %v79_v47 = vadd.f32 %v215_v46, %v72_v43  ;;  %v217_v49 = vsel %vm90_vm6, 1.0, %v399_v25 }
  0xb4   :  { %v216_v48 = vsel %vm83_vm5, 1.0, %v399_v25 }
  0xb5   :  { %v86_v50 = vadd.f32 %v216_v48, %v79_v47 }
  0xb7   :  { %v93_v51 = vadd.f32 %v217_v49, %v86_v50 }
  0xb9   :  { %269 = vmatmul.mubr.f32.vlgmr.msra.gmra.mrb[0].mxu0 %v93_v51 }
 0x18c   :  { %v177_v53 = vpop.f32.mrb[0].mxu0 }
 0x18d   :  { %v194_v54 = vadd.f32 %v218_v52, %v177_v53  ;;  %v270_v55 = vpop.f32.mrb[1].mxu0 }
 0x18f   :  { %195 = vst [vmem:[#allocation8] sm:$0xff] %v194_v54 }
 0x190   :  { %370 = shalt.err (!%p367_p6)
}
 0x191   :  { %s371_s16 = scalar_lea.hbm %s470_s3, 128 }
 0x192   :  { %p372_p7 = scmp.ne.s32.totalorder %s470_s3, %s371_s16  ;;  %p375_p8 = scmp.lt.u32.totalorder %s371_s16, %s470_s3 }
 0x194   :  { %p377_p9 = pnand %p375_p8, %p372_p7 }
 0x196   :  { %380 = shalt.err (!%p377_p9)
}
 0x197   :  { %205 = dma.vmem_to_hbm [thread:$0]  %s203_s12, 128, %s470_s3, [#allocation5]  }
 0x198   :  { %385 = dma.done.wait [#allocation5], 128  }
 0x199   :  { %386 = vsyncadd [#allocation5], 4294967168 }
 0x19a   :  { %209 = vsyncpa [#allocation4], 1 }
 0x19b   :  { %210 = vsyncpa [#allocation7], 1 }
 0x19c   :  { %211 = vsyncpa [#allocation5], 1 }

</bundles_post_ra>
